<compile_context>
chip_gen: v7x
topology: tpu7x:2x2x1
jax: 0.10.0
libtpu: 0.0.40
codegen_flags: <defaults>
</compile_context>

<pallas_src>
import math
from functools import partial

import jax
import jax.numpy as jnp
from jax.experimental import pallas as pl
from jax.experimental.pallas import tpu as pltpu


# ----------------------------------------------------------------------------
# Kernels
# ----------------------------------------------------------------------------
def _layernorm_kernel(x_ref, w_ref, b_ref, o_ref, *, d_model, eps):
    """Per-row LayerNorm: one logical row per physical (lane-aligned) row."""
    inv_n = 1.0 / d_model
    inv_nm1 = (1.0 / (d_model - 1)) if d_model > 1 else float("nan")  # torch NaN
    x = x_ref[...].astype(jnp.float32)                       # (tm, d)
    mean = jnp.sum(x, axis=-1, keepdims=True) * inv_n
    diff = x - mean
    var = jnp.sum(diff * diff, axis=-1, keepdims=True) * inv_nm1
    inv = pl.reciprocal(jnp.sqrt(var) + eps, approx=False)   # exact, (tm, 1)
    y = (diff * inv).astype(w_ref.dtype)                     # bf16 epilogue for bf16 in
    o_ref[...] = (y * w_ref[...] + b_ref[...]).astype(o_ref.dtype)


def _layernorm_packed_kernel(x_ref, w_ref, b_ref, a_ref, at_ref, o_ref, *,
                             d_model, eps):
    """Lane-dense LayerNorm: `fold` logical rows packed into one physical row.

    a_ref is (fold*d, 128) with a[l, j] = 1 iff lane l belongs to logical row j
    (columns j >= fold are zero); at_ref is its transpose. Segmented stats are
    computed with these 0/1 matmuls (Precision.HIGHEST keeps f32 accuracy).
    Padded zero columns give std=0 -> inv=1/eps, but the matching zero rows of
    at_ref drop their contribution, so valid rows are never contaminated.
    """
    inv_n = 1.0 / d_model
    inv_nm1 = (1.0 / (d_model - 1)) if d_model > 1 else float("nan")
    hp = jax.lax.Precision.HIGHEST
    x = x_ref[...].astype(jnp.float32)                       # (tm, fold*d)
    seg = a_ref[...]                                         # (fold*d, 128)
    seg_t = at_ref[...]                                      # (128, fold*d)
    seg_sum = jnp.dot(x, seg, precision=hp, preferred_element_type=jnp.float32)
    mean = seg_sum * inv_n                                   # (tm, 128)
    mean_full = jnp.dot(mean, seg_t, precision=hp,
                        preferred_element_type=jnp.float32)  # broadcast back
    diff = x - mean_full
    seg_sq = jnp.dot(diff * diff, seg, precision=hp,
                     preferred_element_type=jnp.float32)
    std = jnp.sqrt(seg_sq * inv_nm1)                         # (tm, 128)
    inv = pl.reciprocal(std + eps, approx=False)
    inv_full = jnp.dot(inv, seg_t, precision=hp,
                       preferred_element_type=jnp.float32)
    y = (diff * inv_full).astype(w_ref.dtype)
    o_ref[...] = (y * w_ref[...] + b_ref[...]).astype(o_ref.dtype)


# ----------------------------------------------------------------------------
# Generation-aware sizing helpers
# ----------------------------------------------------------------------------
def _vmem_capacity_bytes():
    try:
        return int(pltpu.get_tpu_info().vmem_capacity_bytes)
    except Exception:
        return 64 << 20  # conservative (v7x per-TensorCore)


def _has_multiple_tensorcores():
    # Megacore chips (one device, >1 TensorCore): v4, v5p, v7x.
    try:
        kind = jax.devices()[0].device_kind.lower()
    except Exception:
        return False
    return any(tok in kind for tok in ("v4", "v5p", "v7", "7x"))


def _pick_row_tile(rows, width, itemsize, per_row_bytes, fixed_bytes,
                   vmem_budget, multi_tc, requested=None):
    sublane = max(8, 32 // itemsize)
    # Largest tile whose (double-buffered in/out + f32 temporaries + 25%
    # headroom) footprint fits the generation-aware VMEM budget.
    headroom_per_row = per_row_bytes + per_row_bytes // 4
    budget_rt = max(sublane, (vmem_budget - fixed_bytes) // max(headroom_per_row, 1))
    if requested is None:
        rt = min((8 << 20) // max(width * itemsize, 1), budget_rt)  # ~8 MiB blocks
    else:
        # Guard explicit row_tile: never exceed what VMEM can double-buffer.
        rt = min(int(requested), budget_rt)
    rt = max(sublane, (rt // sublane) * sublane)
    rows_rounded = pl.cdiv(rows, sublane) * sublane
    rt = max(sublane, min(rt, rows_rounded))
    if requested is None and multi_tc:
        # Aim for >= 8 grid steps on multi-TC chips so both TensorCores stay
        # balanced; skipped on 1-TC chips (v5e/v6e) where extra steps only
        # add ~0.35us each.
        while rt > sublane and pl.cdiv(rows, rt) < 8:
            rt = max(sublane, ((rt // 2) // sublane) * sublane)
    return rt


# ----------------------------------------------------------------------------
# Wrapper
# ----------------------------------------------------------------------------
def layer_norm_pallas(x, weight, bias, eps=1e-5, row_tile=None):
    """LayerNorm over the last axis. x: (..., d_model); weight, bias: (d_model,)."""
    orig_shape = x.shape
    d_model = int(orig_shape[-1])
    rows = 1
    for s in orig_shape[:-1]:
        rows *= int(s)

    # bf16 epilogue for bf16 inputs (stats stay f32); f32 otherwise.
    param_dtype = jnp.bfloat16 if x.dtype == jnp.bfloat16 else jnp.float32

    vmem_cap = _vmem_capacity_bytes()
    vmem_budget = (vmem_cap * 3) // 4            # 48 MiB on v7x, 96 MiB on v5e/v6e
    multi_tc = _has_multiple_tensorcores()

    # Lane-dense packing: fold `fold` logical rows into one 128-lane-aligned
    # physical row when d_model is not already a multiple of 128.
    fold = 1
    if d_model % 128 != 0:
        k = 128 // math.gcd(d_model, 128)
        if k * d_model <= 2048:                  # keep segment matrices small
            fold = k
    width = fold * d_model

    x2 = x.reshape(rows, d_model)
    if fold > 1:
        pad = (-rows) % fold
        if pad:
            # Zero tail rows: their (finite) outputs are sliced off below and,
            # since stats are per-segment, never contaminate valid rows.
            x2 = jnp.pad(x2, ((0, pad), (0, 0)))
        packed_rows = (rows + pad) // fold
        xk = x2.reshape(packed_rows, width)
        wk = jnp.tile(weight.astype(param_dtype), fold).reshape(1, width)
        bk = jnp.tile(bias.astype(param_dtype), fold).reshape(1, width)
        lane_seg = jnp.arange(width, dtype=jnp.int32) // d_model
        a = (lane_seg[:, None] == jnp.arange(128, dtype=jnp.int32)[None, :]
             ).astype(jnp.float32)               # (width, 128)
        at = jnp.transpose(a)                    # (128, width)
    else:
        packed_rows = rows
        xk = x2
        wk = weight.astype(param_dtype).reshape(1, width)
        bk = bias.astype(param_dtype).reshape(1, width)

    in_item = jnp.dtype(x.dtype).itemsize
    # 2 pipelined buffers each for input + output, ~4 live f32 temporaries.
    per_row_bytes = width * (4 * in_item + 4 * 4)
    fixed_bytes = 2 * 2 * width * jnp.dtype(param_dtype).itemsize
    if fold > 1:
        fixed_bytes += 2 * 2 * width * 128 * 4   # segment matrices (dbl-buffered)

    rt = _pick_row_tile(packed_rows, width, in_item, per_row_bytes, fixed_bytes,
                        vmem_budget, multi_tc, row_tile)
    grid = (pl.cdiv(packed_rows, rt),)           # remainder block masked by Pallas

    resident = rt * per_row_bytes + fixed_bytes
    vmem_limit = int(min(max(resident + resident // 4, 8 << 20), vmem_budget))

    x_spec = pl.BlockSpec((rt, width), lambda i: (i, 0))
    p_spec = pl.BlockSpec((1, width), lambda i: (0, 0))
    out_spec = pl.BlockSpec((rt, width), lambda i: (i, 0))

    if fold > 1:
        kernel = partial(_layernorm_packed_kernel, d_model=d_model, eps=float(eps))
        in_specs = [x_spec, p_spec, p_spec,
                    pl.BlockSpec((width, 128), lambda i: (0, 0)),
                    pl.BlockSpec((128, width), lambda i: (0, 0))]
        args = (xk, wk, bk, a, at)
    else:
        kernel = partial(_layernorm_kernel, d_model=d_model, eps=float(eps))
        in_specs = [x_spec, p_spec, p_spec]
        args = (xk, wk, bk)

    out = pl.pallas_call(
        kernel,
        out_shape=jax.ShapeDtypeStruct((packed_rows, width), x.dtype),
        grid_spec=pltpu.PrefetchScalarGridSpec(
            num_scalar_prefetch=0,
            grid=grid,
            in_specs=in_specs,
            out_specs=out_spec,
        ),
        compiler_params=pltpu.CompilerParams(
            dimension_semantics=("parallel",),
            vmem_limit_bytes=vmem_limit,
        ),
    )(*args)

    if fold > 1:
        out = out.reshape(packed_rows * fold, d_model)[:rows]
    return out.reshape(orig_shape)


# ----------------------------------------------------------------------------
# Pure-JAX reference (torch semantics) + self-test
# ----------------------------------------------------------------------------
def layer_norm_ref(x, weight, bias, eps=1e-5):
    xf = x.astype(jnp.float32)
    mean = jnp.mean(xf, axis=-1, keepdims=True)
    std = jnp.std(xf, axis=-1, keepdims=True, ddof=1)   # torch unbiased std
    out = (xf - mean) / (std + eps)
    out = out * weight.astype(jnp.float32) + bias.astype(jnp.float32)
    return out.astype(x.dtype)


if __name__ == "__main__":
    key = jax.random.PRNGKey(0)
    k1, k2, k3, kw, kb = jax.random.split(key, 5)

    # Case 1: lane-aligned d_model (128), f32, rows = 2*8.
    d1 = 128
    x1 = jax.random.normal(k1, (2, 8, d1), dtype=jnp.float32)
    w1 = 1.0 + 0.1 * jax.random.normal(kw, (d1,), dtype=jnp.float32)
    b1 = 0.1 * jax.random.normal(kb, (d1,), dtype=jnp.float32)
    out1 = jax.block_until_ready(layer_norm_pallas(x1, w1, b1, eps=1e-5))
    ref1 = layer_norm_ref(x1, w1, b1, eps=1e-5)
    assert out1.shape == x1.shape and out1.dtype == x1.dtype
    assert jnp.allclose(out1, ref1, atol=1e-5, rtol=1e-5), "mismatch (case 1)"

    # Case 2: narrow d_model (32) + ragged rows (3*7=21) -> lane-dense packed
    # path (fold=4), including zero-padded tail rows and the remainder block.
    d2 = 32
    x2 = jax.random.normal(k2, (3, 7, d2), dtype=jnp.float32)
    w2 = 1.0 + 0.1 * jax.random.normal(kw, (d2,), dtype=jnp.float32)
    b2 = 0.1 * jax.random.normal(kb, (d2,), dtype=jnp.float32)
    out2 = jax.block_until_ready(layer_norm_pallas(x2, w2, b2, eps=1e-5))
    ref2 = layer_norm_ref(x2, w2, b2, eps=1e-5)
    assert out2.shape == x2.shape and out2.dtype == x2.dtype
    assert jnp.allclose(out2, ref2, atol=2e-5, rtol=2e-5), "mismatch (case 2)"

    # Case 3: bf16 input -> f32 statistics, bf16 weight/bias epilogue.
    x3 = jax.random.normal(k3, (2, 8, d1), dtype=jnp.float32).astype(jnp.bfloat16)
    w3 = w1.astype(jnp.bfloat16)
    b3 = b1.astype(jnp.bfloat16)
    out3 = jax.block_until_ready(layer_norm_pallas(x3, w3, b3, eps=1e-5))
    ref3 = layer_norm_ref(x3, w3, b3, eps=1e-5)
    assert out3.shape == x3.shape and out3.dtype == x3.dtype
    assert jnp.allclose(out3.astype(jnp.float32), ref3.astype(jnp.float32),
                        atol=5e-2, rtol=5e-2), "mismatch (case 3)"

    print("KERNEL_OK")
</pallas_src>

<mosaic_0001>
module attributes {stable_mosaic.version = 11 : i64} {
  func.func @_layernorm_kernel(%arg0: i32, %arg1: memref<16x128xf32, #tpu.memory_space<vmem>>, %arg2: memref<1x128xf32, #tpu.memory_space<vmem>>, %arg3: memref<1x128xf32, #tpu.memory_space<vmem>>, %arg4: memref<16x128xf32, #tpu.memory_space<vmem>>) attributes {dimension_semantics = [#tpu.dimension_semantics<parallel>], iteration_bounds = array<i64: 1>, scalar_prefetch = 0 : i64, scratch_operands = 0 : i64, tpu.core_type = #tpu.core_type<tc>, window_params = [{transform_indices = @transform_0, window_bounds = array<i64: 16, 128>}, {pipeline_mode = #tpu.pipeline_mode<synchronous>, transform_indices = @transform_1, window_bounds = array<i64: 1, 128>}, {pipeline_mode = #tpu.pipeline_mode<synchronous>, transform_indices = @transform_2, window_bounds = array<i64: 1, 128>}, {transform_indices = @transform_3, window_bounds = array<i64: 16, 128>}]} {
    %c0 = arith.constant 0 : index
    %c0_0 = arith.constant 0 : index
    %0 = vector.load %arg1[%c0, %c0_0] : memref<16x128xf32, #tpu.memory_space<vmem>>, vector<16x128xf32>
    %cst = arith.constant dense<0.000000e+00> : vector<16xf32>
    %1 = vector.multi_reduction <add>, %0, %cst [1] : vector<16x128xf32> to vector<16xf32>
    %2 = vector.shape_cast %1 : vector<16xf32> to vector<16x1xf32>
    %cst_1 = arith.constant 7.812500e-03 : f32
    %3 = vector.broadcast %cst_1 : f32 to vector<16x1xf32>
    %4 = arith.mulf %2, %3 : vector<16x1xf32>
    %5 = vector.broadcast %4 : vector<16x1xf32> to vector<16x128xf32>
    %6 = arith.subf %0, %5 : vector<16x128xf32>
    %7 = arith.mulf %6, %6 : vector<16x128xf32>
    %cst_2 = arith.constant dense<0.000000e+00> : vector<16xf32>
    %8 = vector.multi_reduction <add>, %7, %cst_2 [1] : vector<16x128xf32> to vector<16xf32>
    %9 = vector.shape_cast %8 : vector<16xf32> to vector<16x1xf32>
    %cst_3 = arith.constant 0.00787401571 : f32
    %10 = vector.broadcast %cst_3 : f32 to vector<16x1xf32>
    %11 = arith.mulf %9, %10 : vector<16x1xf32>
    %12 = math.sqrt %11 : vector<16x1xf32>
    %cst_4 = arith.constant 9.99999974E-6 : f32
    %13 = vector.broadcast %cst_4 : f32 to vector<16x1xf32>
    %14 = arith.addf %12, %13 : vector<16x1xf32>
    %15 = tpu.reciprocal %14 : vector<16x1xf32> -> vector<16x1xf32>
    %16 = vector.broadcast %15 : vector<16x1xf32> to vector<16x128xf32>
    %17 = arith.mulf %6, %16 : vector<16x128xf32>
    %c0_5 = arith.constant 0 : index
    %c0_6 = arith.constant 0 : index
    %18 = vector.load %arg2[%c0_5, %c0_6] : memref<1x128xf32, #tpu.memory_space<vmem>>, vector<1x128xf32>
    %19 = vector.broadcast %18 : vector<1x128xf32> to vector<16x128xf32>
    %20 = arith.mulf %17, %19 : vector<16x128xf32>
    %c0_7 = arith.constant 0 : index
    %c0_8 = arith.constant 0 : index
    %21 = vector.load %arg3[%c0_7, %c0_8] : memref<1x128xf32, #tpu.memory_space<vmem>>, vector<1x128xf32>
    %22 = vector.broadcast %21 : vector<1x128xf32> to vector<16x128xf32>
    %23 = arith.addf %20, %22 : vector<16x128xf32>
    %c0_9 = arith.constant 0 : index
    %c0_10 = arith.constant 0 : index
    %24 = vector.load %arg4[%c0_9, %c0_10] : memref<16x128xf32, #tpu.memory_space<vmem>>, vector<16x128xf32>
    tpu.vector_store %arg4[%c0_9, %c0_10], %23 {strides = array<i32>} : memref<16x128xf32, #tpu.memory_space<vmem>>, vector<16x128xf32>,
    return
  }
  func.func @transform_0(%arg0: i32) -> (i32, i32) {
    %c0_i32 = arith.constant 0 : i32
    %c0_i32_0 = arith.constant 0 : i32
    return %arg0, %c0_i32 : i32, i32
  }
  func.func @transform_1(%arg0: i32) -> (i32, i32) {
    %c0_i32 = arith.constant 0 : i32
    %c0_i32_0 = arith.constant 0 : i32
    %c0_i32_1 = arith.constant 0 : i32
    return %c0_i32, %c0_i32_0 : i32, i32
  }
  func.func @transform_2(%arg0: i32) -> (i32, i32) {
    %c0_i32 = arith.constant 0 : i32
    %c0_i32_0 = arith.constant 0 : i32
    %c0_i32_1 = arith.constant 0 : i32
    return %c0_i32, %c0_i32_0 : i32, i32
  }
  func.func @transform_3(%arg0: i32) -> (i32, i32) {
    %c0_i32 = arith.constant 0 : i32
    %c0_i32_0 = arith.constant 0 : i32
    return %arg0, %c0_i32 : i32, i32
  }
}

</mosaic_0001>

<bundles_post_ra>
// kernel: tpu_custom_call.1
= control target key start
LH: loop header
LB: loop body
LE: loop exit
PB: predicated region body
PF: predicated region fallthrough
CT: control target
= control target key end

     0   :  { %8 = vsyncpa [#allocation3], 0  ;;  %s226_s0 = inlined_call_operand.hbm [shape: f32[16,128], index: 0, kind: input, shape index: {}]   ;;  %s227_s1 = inlined_call_operand.vmem [shape: f32[1,128], index: 1, kind: input, shape index: {}]   ;;  %s228_s2 = inlined_call_operand.vmem [shape: f32[1,128], index: 2, kind: input, shape index: {}]   ;;  %s229_s3 = inlined_call_operand.hbm [shape: f32[16,128], index: 3, kind: output, shape index: {}]  }
   0x1   :  { %9 = vsyncpa [#allocation4], 0  ;;  %s166_s12 = smov [#allocation2]   ;;  %s118_s16 = scalar_lea.hbm %s226_s0, 256 }
   0x2   :  { %s15_s13 = sshll.u32 %s166_s12, 4  ;;  %p119_p0 = scmp.ne.s32.totalorder %s226_s0, %s118_s16  ;;  %s16_s13 = int_to_ptr.vmem [resolvable:$true] %s15_s13 }
   0x3   :  { %p122_p1 = scmp.lt.u32.totalorder %s118_s16, %s226_s0 }
   0x5   :  { %p124_p2 = pnand %p122_p1, %p119_p0 }
   0x7   :  { %127 = shalt.err (!%p124_p2)
}
   0x8   :  { %s128_s21 = scalar_lea.vmem %s16_s13, 256  ;;  %p133_p4 = scmp.lt.s32.totalorder %s16_s13, %s16_s13 }
   0x9   :  { %p129_p3 = scmp.ne.s32.totalorder %s16_s13, %s128_s21  ;;  %p134_p5 = scmp.lt.s32.totalorder %s128_s21, %s128_s21 }
   0xb   :  { %p135_p6 = por %p134_p5, %p133_p4 }
   0xd   :  { %p136_p7 = pnand %p135_p6, %p129_p3 }
   0xf   :  { %139 = shalt.err (!%p136_p7)
}
  0x10   :  { %s167_s22 = smov 128   ;;  %s168_s23 = smov 8  }
  0x11   :  { %21 = dma.hbm_to_vmem [thread:$0]  %s226_s0, 256, %s16_s13, [#allocation3], %s167_s22, %s167_s22, %s168_s23  }
  0x12   :  { %162 = dma.done.wait [#allocation3], 256  }
  0x13   :  { %163 = vsyncadd [#allocation3], 4294967040  ;;  %v29_v0 = vld [vmem:[#allocation2] sm:$0xff]  ;;  %v30_v1 = vld [vmem:[#allocation2 + $0x8] sm:$0xff]  ;;  %s169_s29 = smov [#allocation5]  }
  0x14   :  { %31 = vadd.xlane.f32.xlu0 %v29_v0  ;;  %v104_v27 = vld [vmem:[%s227_s1] ss:$0 sm:$0xff]  ;;  %s92_s30 = sshll.u32 %s169_s29, 4  ;;  %s93_s30 = int_to_ptr.vmem [resolvable:$true] %s92_s30 }
  0x15   :  { %v105_v29 = vld [vmem:[%s228_s2] ss:$0 sm:$0xff]  ;;  %s140_s4 = scalar_lea.vmem %s93_s30, 256  ;;  %p145_p9 = scmp.lt.s32.totalorder %s93_s30, %s93_s30 }
  0x16   :  { %p141_p8 = scmp.ne.s32.totalorder %s93_s30, %s140_s4  ;;  %p146_p10 = scmp.lt.s32.totalorder %s140_s4, %s140_s4 }
  0x18   :  { %33 = vadd.xlane.f32.xlu0 %v30_v1  ;;  %p147_p11 = por %p146_p10, %p145_p9 }
  0x1a   :  { %p148_p12 = pnand %p147_p11, %p141_p8 }
  0xa1   :  { %v32_v2 = vpop.xlane.xlu0 %31 }
  0xa2   :  { %v35_v3 = vmul.f32 0.0078125, %v32_v2 }
  0xa4   :  { %v37_v4 = vsub.f32 %v29_v0, %v35_v3 }
  0xa5   :  { %v34_v5 = vpop.xlane.xlu0 %33 }
  0xa6   :  { %v36_v6 = vmul.f32 0.0078125, %v34_v5  ;;  %v39_v7 = vmul.f32 %v37_v4, %v37_v4 }
  0xa8   :  { %v38_v8 = vsub.f32 %v30_v1, %v36_v6  ;;  %41 = vadd.xlane.f32.xlu1 %v39_v7 }
  0xaa   :  { %v40_v9 = vmul.f32 %v38_v8, %v38_v8 }
  0xac   :  { %43 = vadd.xlane.f32.xlu1 %v40_v9 }
 0x135   :  { %v42_v10 = vpop.xlane.xlu1 %41 }
 0x136   :  { %v45_v11 = vmul.f32 0.007874016, %v42_v10 }
 0x138   :  { %110 = vrsqrt.f32 %v45_v11  ;;  %vm49_vm0 = vcmp.eq.f32.partialorder %v45_v11, inf  ;;  %v52_v16 = vand.u32 2147483648, %v45_v11  ;;  %vm51_vm1 = vcmp.eq.f32.partialorder %v45_v11, 0.0 }
 0x139   :  { %v44_v12 = vpop.xlane.xlu1 %43 }
 0x13a   :  { %v46_v13 = vmul.f32 0.007874016, %v44_v12 }
 0x13c   :  { %112 = vrsqrt.f32 %v46_v13  ;;  %vm56_vm2 = vcmp.eq.f32.partialorder %v46_v13, inf  ;;  %v59_v22 = vand.u32 2147483648, %v46_v13  ;;  %vm58_vm3 = vcmp.eq.f32.partialorder %v46_v13, 0.0 }
 0x142   :  { %v111_v14 = vpop.eup %110 }
 0x143   :  { %v48_v15 = vmul.f32 %v111_v14, %v45_v11 }
 0x145   :  { %v50_v17 = vsel %vm49_vm0, %v45_v11, %v48_v15 }
 0x146   :  { %v113_v18 = vpop.eup %112  ;;  %v53_v19 = vsel %vm51_vm1, %v52_v16, %v50_v17 }
 0x147   :  { %v55_v20 = vmul.f32 %v113_v18, %v46_v13  ;;  %v61_v21 = vadd.f32 1e-05, %v53_v19 }
 0x149   :  { %v57_v23 = vsel %vm56_vm2, %v46_v13, %v55_v20  ;;  %114 = vrcp.f32 %v61_v21 }
 0x14a   :  { %v60_v24 = vsel %vm58_vm3, %v59_v22, %v57_v23 }
 0x14b   :  { %v62_v25 = vadd.f32 1e-05, %v60_v24 }
 0x14d   :  { %116 = vrcp.f32 %v62_v25 }
 0x153   :  { %v115_v26 = vpop.eup %114 }
 0x154   :  { %v65_v28 = vmul.f32 %v115_v26, %v37_v4 }
 0x156   :  { %v74_v30 = vmul.f32 %v104_v27, %v65_v28 }
 0x157   :  { %v117_v31 = vpop.eup %116 }
 0x158   :  { %v66_v32 = vmul.f32 %v117_v31, %v38_v8  ;;  %v83_v33 = vadd.f32 %v105_v29, %v74_v30 }
 0x15a   :  { %v75_v34 = vmul.f32 %v104_v27, %v66_v32  ;;  %85 = vst [vmem:[#allocation5] sm:$0xff] %v83_v33 }
 0x15c   :  { %v84_v35 = vadd.f32 %v105_v29, %v75_v34 }
 0x15e   :  { %86 = vst [vmem:[#allocation5 + $0x8] sm:$0xff] %v84_v35 }
 0x15f   :  { %151 = shalt.err (!%p148_p12)
}
 0x160   :  { %s152_s5 = scalar_lea.hbm %s229_s3, 256 }
 0x161   :  { %p153_p13 = scmp.ne.s32.totalorder %s229_s3, %s152_s5  ;;  %p156_p0 = scmp.lt.u32.totalorder %s152_s5, %s229_s3 }
 0x163   :  { %p158_p1 = pnand %p156_p0, %p153_p13 }
 0x165   :  { %161 = shalt.err (!%p158_p1)
}
 0x166   :  { %98 = dma.vmem_to_hbm [thread:$0]  %s93_s30, 256, %s229_s3, [#allocation4], %s167_s22, %s167_s22, %s168_s23  }
 0x167   :  { %164 = dma.done.wait [#allocation4], 256  }
 0x168   :  { %165 = vsyncadd [#allocation4], 4294967040 }
 0x169   :  { %102 = vsyncpa [#allocation3], 1 }
 0x16a   :  { %103 = vsyncpa [#allocation4], 1 }

</bundles_post_ra>
